<compile_context>
chip_gen: v5e
topology: v5e:2x2
jax: 0.10.0
libtpu: 0.0.40
codegen_flags: <defaults>
</compile_context>

<pallas_src>
import jax
import jax.numpy as jnp
import numpy as np
from jax.experimental import pallas as pl
from jax.experimental.pallas import tpu as pltpu

_SUBLANE = 16  # sublane multiple that also satisfies bf16 packing


def _round_up(n: int, m: int) -> int:
    return ((n + m - 1) // m) * m


def dueling_dqn_kernel(x_ref, w1_ref, b1_ref, wq_ref, q_ref):
    # fc1 on the MXU (bf16 x bf16 -> f32 accumulate); bias add + ReLU in f32 on the VPU.
    h = jnp.dot(x_ref[...], w1_ref[...], preferred_element_type=jnp.float32)
    h = jnp.maximum(h + b1_ref[...], 0.0)
    # Head matmul: dueling combine (A + V - mean(A)) and both head biases are folded
    # into wq_aug host-side (row H multiplies the constant-1 hidden unit == 1 exactly).
    q_ref[...] = jnp.dot(
        h.astype(wq_ref.dtype), wq_ref[...], preferred_element_type=jnp.float32
    )


def pack_params(w1, b1, wa, ba, wv, bv, *, lane: int = 128,
                weight_dtype=jnp.bfloat16):
    """One-time host-side packing (exact by linearity; math in f32, cast once).

    Returns:
      w1_aug: [S, H_pad]    bf16   fc1 weight, zero-padded hidden columns
      b1_aug: [1, H_pad]    f32    fc1 bias; column H carries 1.0 -> constant-1 hidden unit
      wq_aug: [H_pad, N_pad] bf16  folded head (WA + WV - mean(WA)); row H = folded head bias
    """
    S, H = w1.shape
    A = wa.shape[1]

    # Q = h @ Wq + bq  with  Wq = WA + WV - mean(WA, axis=1),  bq = bA + bV - mean(bA)
    wq = wa + wv - jnp.mean(wa, axis=1, keepdims=True)   # [H, A]
    bq = ba + bv - jnp.mean(ba, axis=1, keepdims=True)   # [1, A]

    h_pad = _round_up(H + 1, lane)   # +1: constant-1 hidden unit carrying the head bias
    n_pad = _round_up(A, lane)       # lane-dense output

    w1_aug = jnp.zeros((S, h_pad), jnp.float32).at[:, :H].set(w1)
    b1_aug = jnp.zeros((1, h_pad), jnp.float32).at[:, :H].set(b1)
    b1_aug = b1_aug.at[:, H].set(1.0)      # ReLU(0 + 1) == 1 exactly, even after bf16 h cast

    wq_aug = jnp.zeros((h_pad, n_pad), jnp.float32)
    wq_aug = wq_aug.at[:H, :A].set(wq)
    wq_aug = wq_aug.at[H, :A].set(bq[0])

    return w1_aug.astype(weight_dtype), b1_aug, wq_aug.astype(weight_dtype)


def dueling_dqn_forward(x, w1_aug, b1_aug, wq_aug, action_dim, *,
                        max_batch_tile: int = 2048, slice_output: bool = True):
    B, S = x.shape
    s_w, h_pad = w1_aug.shape
    assert s_w == S
    n_pad = wq_aug.shape[1]

    # bf16 activations halve the x DMA bytes; accumulation stays f32 in-kernel.
    x = x.astype(w1_aug.dtype)

    # Sublane-aligned batch tile; no explicit pad -> Pallas masks the ragged last block.
    tb = min(_round_up(B, _SUBLANE), max_batch_tile)
    # Ensure >= 2 grid steps when the batch is big enough so ("parallel",) can
    # shard across both v7x TensorCores (no effect on single-TC v5e/v6e).
    if B >= 2 * _SUBLANE and pl.cdiv(B, tb) < 2:
        tb = _round_up(pl.cdiv(B, 2), _SUBLANE)
    grid = (pl.cdiv(B, tb),)

    w_isz = w1_aug.dtype.itemsize
    flops = 2 * B * S * h_pad + 2 * B * h_pad * n_pad
    bytes_accessed = (B * S * w_isz + S * h_pad * w_isz + h_pad * 4
                      + h_pad * n_pad * w_isz + B * n_pad * 4)

    q_full = pl.pallas_call(
        dueling_dqn_kernel,
        out_shape=jax.ShapeDtypeStruct((B, n_pad), jnp.float32),
        grid=grid,
        in_specs=[
            pl.BlockSpec((tb, S), lambda i: (i, 0)),
            pl.BlockSpec((S, h_pad), lambda i: (0, 0)),
            pl.BlockSpec((1, h_pad), lambda i: (0, 0)),
            pl.BlockSpec((h_pad, n_pad), lambda i: (0, 0)),
        ],
        out_specs=pl.BlockSpec((tb, n_pad), lambda i: (i, 0)),
        compiler_params=pltpu.CompilerParams(
            dimension_semantics=("parallel",),
        ),
        cost_estimate=pl.CostEstimate(
            flops=flops, transcendentals=0, bytes_accessed=bytes_accessed
        ),
    )(x, w1_aug, b1_aug, wq_aug)

    if slice_output:
        return q_full[:, :action_dim]
    return q_full  # padded lane-dense Q; lanes >= action_dim are exactly 0


def init_params(key, state_dim, action_dim, hidden_dim):
    """Deterministic init mimicking PyTorch nn.Linear default (uniform +/- 1/sqrt(fan_in)).
    Weights stored as [in, out] (transposed vs. torch's [out, in])."""
    k1, k2, k3, k4, k5, k6 = jax.random.split(key, 6)

    def u(k, shape, fan_in):
        bound = 1.0 / np.sqrt(fan_in)
        return jax.random.uniform(k, shape, jnp.float32, -bound, bound)

    w1 = u(k1, (state_dim, hidden_dim), state_dim)
    b1 = u(k2, (1, hidden_dim), state_dim)
    wa = u(k3, (hidden_dim, action_dim), hidden_dim)
    ba = u(k4, (1, action_dim), hidden_dim)
    wv = u(k5, (hidden_dim, 1), hidden_dim)
    bv = u(k6, (1, 1), hidden_dim)
    return w1, b1, wa, ba, wv, bv


if __name__ == "__main__":
    # Small shapes consistent with the module (hidden_dim=64 is the module default).
    batch, state_dim, action_dim, hidden_dim = 2, 8, 4, 64

    key = jax.random.PRNGKey(0)
    kx, kp = jax.random.split(key)
    x = jax.random.normal(kx, (batch, state_dim), jnp.float32)
    raw = init_params(kp, state_dim, action_dim, hidden_dim)

    # Plain-JAX reference of the original module math (f32).
    w1, b1, wa, ba, wv, bv = raw
    h_ref = jnp.maximum(x @ w1 + b1, 0.0)
    a_ref = h_ref @ wa + ba
    v_ref = h_ref @ wv + bv
    q_ref = v_ref + a_ref - jnp.mean(a_ref, axis=-1, keepdims=True)

    # --- f32-packed path: tight check of the folding algebra + kernel plumbing.
    w1_f, b1_f, wq_f = pack_params(*raw, weight_dtype=jnp.float32)
    q_f32 = jax.block_until_ready(dueling_dqn_forward(x, w1_f, b1_f, wq_f, action_dim))
    assert q_f32.shape == (batch, action_dim)
    assert np.allclose(np.asarray(q_f32), np.asarray(q_ref), atol=1e-5, rtol=1e-5)

    # --- bf16 fast path (default): bf16 weights/activations, f32 accumulation.
    w1_b, b1_b, wq_b = pack_params(*raw)
    q_bf16 = jax.block_until_ready(dueling_dqn_forward(x, w1_b, b1_b, wq_b, action_dim))
    assert q_bf16.shape == (batch, action_dim)
    assert np.allclose(np.asarray(q_bf16), np.asarray(q_ref), atol=5e-2, rtol=5e-2)

    print("KERNEL_OK")
</pallas_src>

<mosaic_0001>
module attributes {stable_mosaic.version = 11 : i64} {
  func.func @dueling_dqn_kernel(%arg0: i32, %arg1: memref<16x8xf32, #tpu.memory_space<vmem>>, %arg2: memref<8x128xf32, #tpu.memory_space<vmem>>, %arg3: memref<1x128xf32, #tpu.memory_space<vmem>>, %arg4: memref<128x128xf32, #tpu.memory_space<vmem>>, %arg5: memref<16x128xf32, #tpu.memory_space<vmem>>) attributes {dimension_semantics = [#tpu.dimension_semantics<parallel>], iteration_bounds = array<i64: 1>, scalar_prefetch = 0 : i64, scratch_operands = 0 : i64, tpu.core_type = #tpu.core_type<tc>, window_params = [{transform_indices = @transform_0, window_bounds = array<i64: 16, 8>}, {pipeline_mode = #tpu.pipeline_mode<synchronous>, transform_indices = @transform_1, window_bounds = array<i64: 8, 128>}, {pipeline_mode = #tpu.pipeline_mode<synchronous>, transform_indices = @transform_2, window_bounds = array<i64: 1, 128>}, {pipeline_mode = #tpu.pipeline_mode<synchronous>, transform_indices = @transform_3, window_bounds = array<i64: 128, 128>}, {transform_indices = @transform_4, window_bounds = array<i64: 16, 128>}]} {
    %c0 = arith.constant 0 : index
    %c0_0 = arith.constant 0 : index
    %0 = vector.load %arg1[%c0, %c0_0] : memref<16x8xf32, #tpu.memory_space<vmem>>, vector<16x8xf32>
    %c0_1 = arith.constant 0 : index
    %c0_2 = arith.constant 0 : index
    %1 = vector.load %arg2[%c0_1, %c0_2] : memref<8x128xf32, #tpu.memory_space<vmem>>, vector<8x128xf32>
    %cst = arith.constant dense<0.000000e+00> : vector<16x128xf32>
    %2 = tpu.matmul %0, %1, %cst {dimension_numbers = #tpu.dot_dimension_numbers<[1], [0], [0], [1], [0, 0, 1, 1], [], []>} : vector<16x8xf32>, vector<8x128xf32>, vector<16x128xf32> -> vector<16x128xf32>
    %c0_3 = arith.constant 0 : index
    %c0_4 = arith.constant 0 : index
    %3 = vector.load %arg3[%c0_3, %c0_4] : memref<1x128xf32, #tpu.memory_space<vmem>>, vector<1x128xf32>
    %4 = vector.broadcast %3 : vector<1x128xf32> to vector<16x128xf32>
    %5 = arith.addf %2, %4 : vector<16x128xf32>
    %cst_5 = arith.constant 0.000000e+00 : f32
    %6 = vector.broadcast %cst_5 : f32 to vector<16x128xf32>
    %7 = arith.maximumf %5, %6 : vector<16x128xf32>
    %c0_6 = arith.constant 0 : index
    %c0_7 = arith.constant 0 : index
    %8 = vector.load %arg4[%c0_6, %c0_7] : memref<128x128xf32, #tpu.memory_space<vmem>>, vector<128x128xf32>
    %cst_8 = arith.constant dense<0.000000e+00> : vector<16x128xf32>
    %9 = tpu.matmul %7, %8, %cst_8 {dimension_numbers = #tpu.dot_dimension_numbers<[1], [0], [0], [1], [0, 0, 1, 1], [], []>} : vector<16x128xf32>, vector<128x128xf32>, vector<16x128xf32> -> vector<16x128xf32>
    %c0_9 = arith.constant 0 : index
    %c0_10 = arith.constant 0 : index
    %10 = vector.load %arg5[%c0_9, %c0_10] : memref<16x128xf32, #tpu.memory_space<vmem>>, vector<16x128xf32>
    tpu.vector_store %arg5[%c0_9, %c0_10], %9 {strides = array<i32>} : memref<16x128xf32, #tpu.memory_space<vmem>>, vector<16x128xf32>,
    return
  }
  func.func @transform_0(%arg0: i32) -> (i32, i32) {
    %c0_i32 = arith.constant 0 : i32
    %c0_i32_0 = arith.constant 0 : i32
    return %arg0, %c0_i32 : i32, i32
  }
  func.func @transform_1(%arg0: i32) -> (i32, i32) {
    %c0_i32 = arith.constant 0 : i32
    %c0_i32_0 = arith.constant 0 : i32
    %c0_i32_1 = arith.constant 0 : i32
    return %c0_i32, %c0_i32_0 : i32, i32
  }
  func.func @transform_2(%arg0: i32) -> (i32, i32) {
    %c0_i32 = arith.constant 0 : i32
    %c0_i32_0 = arith.constant 0 : i32
    %c0_i32_1 = arith.constant 0 : i32
    return %c0_i32, %c0_i32_0 : i32, i32
  }
  func.func @transform_3(%arg0: i32) -> (i32, i32) {
    %c0_i32 = arith.constant 0 : i32
    %c0_i32_0 = arith.constant 0 : i32
    %c0_i32_1 = arith.constant 0 : i32
    return %c0_i32, %c0_i32_0 : i32, i32
  }
  func.func @transform_4(%arg0: i32) -> (i32, i32) {
    %c0_i32 = arith.constant 0 : i32
    %c0_i32_0 = arith.constant 0 : i32
    return %arg0, %c0_i32 : i32, i32
  }
}

</mosaic_0001>

<bundles_post_ra>
// kernel: tpu_custom_call.1
= control target key start
LH: loop header
LB: loop body
LE: loop exit
PB: predicated region body
PF: predicated region fallthrough
CT: control target
= control target key end

     0   :  { %9 = vsyncpa [#allocation3], 0  ;;  %s348_s0 = inlined_call_operand.hbm [shape: f32[2,8], index: 0, kind: input, shape index: {}]   ;;  %s349_s1 = inlined_call_operand.hbm [shape: f32[8,128], index: 1, kind: input, shape index: {}]   ;;  %s350_s2 = inlined_call_operand.vmem [shape: f32[1,128], index: 2, kind: input, shape index: {}]   ;;  %s351_s3 = inlined_call_operand.hbm [shape: f32[128,128], index: 3, kind: input, shape index: {}]   ;;  %s352_s4 = inlined_call_operand.hbm [shape: f32[2,128], index: 4, kind: output, shape index: {}]  }
   0x1   :  { %10 = vsyncpa [#allocation6], 0 }
   0x2   :  { %11 = vsyncpa [#allocation4], 0  ;;  %s30_s17 = sshll.u32 %s349_s1, 4  ;;  %s31_s17 = int_to_ptr.hbm [resolvable:$true] %s30_s17 }
   0x3   :  { %15 = vsyncadd [#allocation3], 224  ;;  %s292_s18 = smov [#allocation5]   ;;  %s16_s22 = sshll.u32 %s348_s0, 4  ;;  %s17_s22 = int_to_ptr.hbm [resolvable:$true] %s16_s22 }
   0x4   :  { %s32_s19 = sshll.u32 %s292_s18, 4  ;;  %s293_s23 = smov [#allocation2]   ;;  %s33_s19 = int_to_ptr.vmem [resolvable:$true] %s32_s19 }
   0x5   :  { %35 = dma.hbm_to_vmem [thread:$0]  %s31_s17, 128, %s33_s19, [#allocation6]  }
   0x6   :  { %s18_s24 = sshll.u32 %s293_s23, 4  ;;  %s294_s25 = smov 32   ;;  %s19_s24 = int_to_ptr.vmem [resolvable:$true] %s18_s24 }
   0x7   :  { %s295_s26 = smov 2   ;;  %s42_s28 = sshll.u32 %s351_s3, 4  ;;  %s43_s28 = int_to_ptr.hbm [resolvable:$true] %s42_s28 }
   0x8   :  { %24 = dma.hbm_to_vmem [thread:$0]  %s17_s22, 32, %s19_s24, [#allocation3], %s294_s25, %s294_s25, %s295_s26  }
   0x9   :  { %s296_s29 = smov [#allocation7]   ;;  %s297_s0 = smov 128  }
   0xa   :  { %s44_s30 = sshll.u32 %s296_s29, 4  ;;  %s298_s5 = smov 8   ;;  %s45_s30 = int_to_ptr.vmem [resolvable:$true] %s44_s30 }
   0xb   :  { %50 = dma.hbm_to_vmem [thread:$0]  %s43_s28, 2048, %s45_s30, [#allocation6], %s297_s0, %s297_s0, %s298_s5  }
   0xc   :  { %286 = dma.done.wait [#allocation3], 256  }
   0xd   :  { %287 = vsyncadd [#allocation3], 4294967040 }
   0xe   :  { %288 = dma.done.wait [#allocation6], 2176  }
   0xf   :  { %289 = vsyncadd [#allocation6], 4294965120  ;;  %vm70_vm0 = vcmask 64512   ;;  %v65_v0 = vld [vmem:[#allocation5] sm:$0xff]  ;;  %v63_v1 = vld [vmem:[#allocation2] sm:$0xff] }
  0x10   :  { %92 = vmatpush.msra.mxu0 %v65_v0  ;;  %v117_v2 = vld [vmem:[#allocation7 + $0x78] sm:$0xff]  ;;  %v116_v3 = vld [vmem:[#allocation7 + $0x70] sm:$0xff]  ;;  %v115_v4 = vld [vmem:[#allocation7 + $0x68] sm:$0xff] }
  0x11   :  { %163 = vmatmul.msk.f32.vlgmr.msra.gmra.mxu0 %vm70_vm0, %v63_v1  ;;  %118 = vmatpush.msra.mxu1 %v117_v2  ;;  %v114_v5 = vld [vmem:[#allocation7 + $0x60] sm:$0xff]  ;;  %v64_v6 = vld [vmem:[#allocation2 + $0x8] sm:$0xff]  ;;  %v113_v7 = vld [vmem:[#allocation7 + $0x58] sm:$0xff] }
  0x12   :  { %165 = vmatpush.msra.mxu2 %v117_v2  ;;  %v112_v8 = vld [vmem:[#allocation7 + $0x50] sm:$0xff]  ;;  %v111_v9 = vld [vmem:[#allocation7 + $0x48] sm:$0xff]  ;;  %v110_v10 = vld [vmem:[#allocation7 + $0x40] sm:$0xff] }
  0x13   :  { %119 = vmatpush.msra.mxu1 %v116_v3  ;;  %v109_v11 = vld [vmem:[#allocation7 + $0x38] sm:$0xff]  ;;  %v108_v12 = vld [vmem:[#allocation7 + $0x30] sm:$0xff]  ;;  %v107_v13 = vld [vmem:[#allocation7 + $0x28] sm:$0xff] }
  0x14   :  { %166 = vmatpush.msra.mxu2 %v116_v3  ;;  %v106_v14 = vld [vmem:[#allocation7 + $0x20] sm:$0xff]  ;;  %v105_v15 = vld [vmem:[#allocation7 + $0x18] sm:$0xff]  ;;  %v104_v16 = vld [vmem:[#allocation7 + $0x10] sm:$0xff] }
  0x15   :  { %120 = vmatpush.msra.mxu1 %v115_v4  ;;  %v103_v17 = vld [vmem:[#allocation7 + $0x8] sm:$0xff]  ;;  %v102_v18 = vld [vmem:[#allocation7] sm:$0xff] }
  0x16   :  { %167 = vmatpush.msra.mxu2 %v115_v4  ;;  %v189_v19 = vld [vmem:[%s350_s2] ss:$0 sm:$0xff] }
  0x17   :  { %121 = vmatpush.msra.mxu1 %v114_v5 }
  0x18   :  { %168 = vmatpush.msra.mxu2 %v114_v5 }
  0x19   :  { %164 = vmatmul.msk.f32.gmra.mxu0 %vm70_vm0, %v64_v6  ;;  %122 = vmatpush.msra.mxu1 %v113_v7 }
  0x1a   :  { %169 = vmatpush.msra.mxu2 %v113_v7 }
  0x1b   :  { %123 = vmatpush.msra.mxu1 %v112_v8 }
  0x1c   :  { %170 = vmatpush.msra.mxu2 %v112_v8 }
  0x1d   :  { %124 = vmatpush.msra.mxu1 %v111_v9 }
  0x1e   :  { %171 = vmatpush.msra.mxu2 %v111_v9 }
  0x1f   :  { %125 = vmatpush.msra.mxu1 %v110_v10 }
  0x20   :  { %172 = vmatpush.msra.mxu2 %v110_v10 }
  0x21   :  { %126 = vmatpush.msra.mxu1 %v109_v11 }
  0x22   :  { %173 = vmatpush.msra.mxu2 %v109_v11 }
  0x23   :  { %127 = vmatpush.msra.mxu1 %v108_v12 }
  0x24   :  { %174 = vmatpush.msra.mxu2 %v108_v12 }
  0x25   :  { %128 = vmatpush.msra.mxu1 %v107_v13 }
  0x26   :  { %175 = vmatpush.msra.mxu2 %v107_v13 }
  0x27   :  { %129 = vmatpush.msra.mxu1 %v106_v14 }
  0x28   :  { %176 = vmatpush.msra.mxu2 %v106_v14 }
  0x29   :  { %130 = vmatpush.msra.mxu1 %v105_v15 }
  0x2a   :  { %177 = vmatpush.msra.mxu2 %v105_v15 }
  0x2b   :  { %131 = vmatpush.msra.mxu1 %v104_v16 }
  0x2c   :  { %178 = vmatpush.msra.mxu2 %v104_v16 }
  0x2d   :  { %132 = vmatpush.msra.mxu1 %v103_v17 }
  0x2e   :  { %179 = vmatpush.msra.mxu2 %v103_v17 }
  0x2f   :  { %133 = vmatpush.msra.mxu1 %v102_v18 }
  0x30   :  { %180 = vmatpush.msra.mxu2 %v102_v18 }
  0x8e   :  { %v94_v20 = vpop.f32.mrf.mxu0 }
  0x8f   :  { %v95_v21 = vadd.f32 %v189_v19, %v94_v20 }
  0x91   :  { %v100_v22 = vmax.f32 %v95_v21, 0.0 }
  0x93   :  { %134 = vmatmul.f32.vlgmr.msra.gmra.mxu1 %v100_v22 }
  0x96   :  { %v97_v23 = vpop.f32.mrf.mxu0 }
  0x97   :  { %v98_v24 = vadd.f32 %v189_v19, %v97_v23 }
  0x99   :  { %v101_v25 = vmax.f32 %v98_v24, 0.0 }
  0x9b   :  { %137 = vmatmul.f32.vlgmr.msra.gmra.mxu2 %v101_v25 }
 0x110   :  { %v135_v26 = vpop.f32.mrf.mxu1 }
 0x111   :  { %141 = vst [vmem:[#allocation8] sm:$0xff] %v135_v26 }
 0x11e   :  { %v138_v27 = vpop.f32.mrf.mxu2 }
 0x11f   :  { %142 = vst [vmem:[#allocation8 + $0x8] sm:$0xff] %v138_v27 }
 0x120   :  { %146 = vsyncadd [#allocation4], 224  ;;  %s149_s9 = sshll.u32 %s352_s4, 4  ;;  %s299_s10 = smov [#allocation8]   ;;  %s150_s9 = int_to_ptr.hbm [resolvable:$true] %s149_s9 }
 0x121   :  { %s147_s11 = sshll.u32 %s299_s10, 4  ;;  %s148_s11 = int_to_ptr.vmem [resolvable:$true] %s147_s11 }
 0x122   :  { %155 = dma.vmem_to_hbm [thread:$0]  %s148_s11, 32, %s150_s9, [#allocation4], %s294_s25, %s294_s25, %s295_s26  }
 0x123   :  { %290 = dma.done.wait [#allocation4], 256  }
 0x124   :  { %291 = vsyncadd [#allocation4], 4294967040 }
 0x125   :  { %160 = vsyncpa [#allocation3], 1 }
 0x126   :  { %161 = vsyncpa [#allocation6], 1 }
 0x127   :  { %162 = vsyncpa [#allocation4], 1 }

</bundles_post_ra>
